<compile_context>
chip_gen: v5e
topology: v5e:2x2
jax: 0.10.0
libtpu: 0.0.40
codegen_flags: <defaults>
</compile_context>

<pallas_src>
import functools

import jax
import jax.numpy as jnp
from jax.experimental import pallas as pl
from jax.experimental.pallas import tpu as pltpu


def _round_up(n: int, m: int) -> int:
    return ((n + m - 1) // m) * m


# ----------------------------------------------------------------------------
# Kernel
# ----------------------------------------------------------------------------
def _make_mlp_kernel(num_layers: int, num_masks: int):
    """Kernel ref order: x, w0, b0, ..., w_{L-1}, b_{L-1}, [masks...], out."""

    def kernel(*refs):
        x_ref = refs[0]
        o_ref = refs[-1]
        wb_refs = refs[1 : 1 + 2 * num_layers]
        mask_refs = refs[1 + 2 * num_layers : -1]

        h = x_ref[...].astype(jnp.float32)
        mi = 0
        for li in range(num_layers):
            w = wb_refs[2 * li][...]                       # [in_p, out_p], mxu dtype
            b = wb_refs[2 * li + 1][...].astype(jnp.float32)  # [1, out_p]
            # MXU matmul: operands in the weight dtype (bf16 fast path), f32 accum.
            h = jnp.dot(h.astype(w.dtype), w,
                        preferred_element_type=jnp.float32) + b
            if li < num_layers - 1:
                h = jnp.maximum(h, 0.0)                    # ReLU (VPU, f32)
                # Dropout only after the 2nd..last hidden activation, matching
                # the PyTorch module (no Dropout after the first hidden layer).
                if li >= 1 and num_masks > 0:
                    h = h * mask_refs[mi][...]             # mask pre-scaled by 1/(1-p)
                    mi += 1

        o_ref[...] = h.astype(o_ref.dtype)

    return kernel


# ----------------------------------------------------------------------------
# Wrapper
# ----------------------------------------------------------------------------
def mouse_mlp_forward(x, params, *, dropout_prob=0.1, training=False,
                      rng_key=None, block_batch=256,
                      mxu_dtype=jnp.bfloat16, lane=128):
    """Forward pass of MouseMLP via one pallas_call.

    params: list of (W, b) with W of shape [in, out] (transposed vs PyTorch),
            b of shape [1, out], both float32.
    """
    num_layers = len(params)
    batch, in_features = x.shape
    out_features = params[-1][0].shape[1]

    # ---- padded geometry -----------------------------------------------------
    dims = [in_features] + [w.shape[1] for w, _ in params]
    pdims = [_round_up(d, lane) for d in dims]

    block_tm = min(block_batch, _round_up(batch, 8))
    padded_batch = _round_up(batch, block_tm)

    # ---- pad inputs / params (zero padding is exact for Linear/ReLU/Dropout) --
    x_p = jnp.zeros((padded_batch, pdims[0]), x.dtype)
    x_p = x_p.at[:batch, :in_features].set(x)

    wb_p = []
    for li, (w, b) in enumerate(params):
        w_p = jnp.zeros((pdims[li], pdims[li + 1]), mxu_dtype)
        w_p = w_p.at[: w.shape[0], : w.shape[1]].set(w.astype(mxu_dtype))
        b_p = jnp.zeros((1, pdims[li + 1]), jnp.float32)
        b_p = b_p.at[:, : b.shape[1]].set(b.astype(jnp.float32))
        wb_p.extend([w_p, b_p])

    # ---- dropout masks (training only), pre-scaled by 1/(1-p) ----------------
    masks = []
    if training and dropout_prob > 0.0 and num_layers > 2:
        assert rng_key is not None, "training=True requires rng_key"
        keys = jax.random.split(rng_key, num_layers - 2)
        for di in range(num_layers - 2):
            width = pdims[di + 2]  # output width of hidden linear layer di+1
            keep = jax.random.bernoulli(keys[di], 1.0 - dropout_prob,
                                        (padded_batch, width))
            masks.append(keep.astype(jnp.float32) / (1.0 - dropout_prob))

    # ---- specs ----------------------------------------------------------------
    grid = (padded_batch // block_tm,)

    in_specs = [pl.BlockSpec((block_tm, pdims[0]), lambda i: (i, 0))]
    for li in range(num_layers):
        in_specs.append(pl.BlockSpec((pdims[li], pdims[li + 1]), lambda i: (0, 0)))
        in_specs.append(pl.BlockSpec((1, pdims[li + 1]), lambda i: (0, 0)))
    for m in masks:
        in_specs.append(pl.BlockSpec((block_tm, m.shape[1]), lambda i: (i, 0)))

    out_specs = pl.BlockSpec((block_tm, pdims[-1]), lambda i: (i, 0))

    # ---- cost estimate + VMEM budget ------------------------------------------
    flops = 2 * padded_batch * sum(pdims[i] * pdims[i + 1]
                                   for i in range(num_layers))
    param_bytes = sum(int(a.size) * a.dtype.itemsize for a in wb_p)
    mask_bytes = sum(int(m.size) * m.dtype.itemsize for m in masks)
    io_bytes = (int(x_p.size) * x_p.dtype.itemsize
                + padded_batch * pdims[-1] * x.dtype.itemsize
                + mask_bytes)
    cost = pl.CostEstimate(flops=flops, transcendentals=0,
                           bytes_accessed=param_bytes + io_bytes)

    tile_bytes = block_tm * (pdims[0] * x.dtype.itemsize
                             + pdims[-1] * x.dtype.itemsize
                             + sum(m.shape[1] * 4 for m in masks))
    work_bytes = 4 * block_tm * max(pdims) * 4  # live f32 activation workspace
    vmem_limit = 2 * param_bytes + 2 * tile_bytes + work_bytes + (8 << 20)
    vmem_limit = int(min(max(vmem_limit, 32 << 20), 100 << 20))

    kernel = _make_mlp_kernel(num_layers, len(masks))

    out_p = pl.pallas_call(
        kernel,
        out_shape=jax.ShapeDtypeStruct((padded_batch, pdims[-1]), x.dtype),
        grid=grid,
        in_specs=in_specs,
        out_specs=out_specs,
        compiler_params=pltpu.CompilerParams(
            dimension_semantics=("parallel",),   # megacore sharding on v7x
            vmem_limit_bytes=vmem_limit,
        ),
        cost_estimate=cost,
    )(x_p, *wb_p, *masks)

    return out_p[:batch, :out_features]


# ----------------------------------------------------------------------------
# Deterministic parameter construction (mimics nn.Linear U(-1/sqrt(in), 1/sqrt(in)))
# ----------------------------------------------------------------------------
def init_mouse_mlp_params(key, input_size, hidden_sizes, output_size,
                          dtype=jnp.float32):
    dims = [input_size] + list(hidden_sizes) + [output_size]
    params = []
    for i in range(len(dims) - 1):
        fan_in, fan_out = dims[i], dims[i + 1]
        key, kw, kb = jax.random.split(key, 3)
        bound = 1.0 / (fan_in ** 0.5)
        # PyTorch stores weight as [out, in]; transpose once to [in, out].
        w_pt = jax.random.uniform(kw, (fan_out, fan_in), dtype, -bound, bound)
        b = jax.random.uniform(kb, (fan_out,), dtype, -bound, bound)
        params.append((w_pt.T, b.reshape(1, fan_out)))
    return params


# Pure-JAX reference (eval mode: Dropout is identity).
def mouse_mlp_reference(x, params):
    h = x
    for li, (w, b) in enumerate(params):
        h = h @ w + b
        if li < len(params) - 1:
            h = jnp.maximum(h, 0.0)
    return h


# ----------------------------------------------------------------------------
# Main
# ----------------------------------------------------------------------------
if __name__ == "__main__":
    input_size = 16
    hidden_sizes = [32, 64]
    output_size = 8
    batch = 4

    key = jax.random.PRNGKey(0)
    key, kx = jax.random.split(key)
    x = jax.random.normal(kx, (batch, input_size), dtype=jnp.float32)
    params = init_mouse_mlp_params(key, input_size, hidden_sizes, output_size)

    ref = mouse_mlp_reference(x, params)

    # Eval mode, f32 MXU path: tight correctness check.
    fwd_f32 = jax.jit(functools.partial(
        mouse_mlp_forward, dropout_prob=0.1, training=False,
        mxu_dtype=jnp.float32))
    out_f32 = jax.block_until_ready(fwd_f32(x, params))
    assert out_f32.shape == (batch, output_size)
    assert jnp.allclose(out_f32, ref, atol=1e-5, rtol=1e-5), "f32 mismatch vs reference"

    # Eval mode, bf16 MXU fast path (native on v5e/v6e/v7x): loose check.
    fwd_bf16 = jax.jit(functools.partial(
        mouse_mlp_forward, dropout_prob=0.1, training=False,
        mxu_dtype=jnp.bfloat16))
    out_bf16 = jax.block_until_ready(fwd_bf16(x, params))
    assert out_bf16.shape == (batch, output_size)
    assert jnp.allclose(out_bf16, ref, atol=5e-2, rtol=5e-2), "bf16 mismatch vs reference"

    # Training mode: dropout via host-generated, pre-scaled keep masks.
    out_train = jax.block_until_ready(
        mouse_mlp_forward(x, params, dropout_prob=0.1, training=True,
                          rng_key=jax.random.PRNGKey(42),
                          mxu_dtype=jnp.float32))
    assert out_train.shape == (batch, output_size)
    assert bool(jnp.all(jnp.isfinite(out_train)))

    print("KERNEL_OK")
</pallas_src>

<mosaic_0001>
module attributes {stable_mosaic.version = 11 : i64} {
  func.func @kernel(%arg0: i32, %arg1: memref<8x128xf32, #tpu.memory_space<vmem>>, %arg2: memref<128x128xf32, #tpu.memory_space<vmem>>, %arg3: memref<1x128xf32, #tpu.memory_space<vmem>>, %arg4: memref<128x128xf32, #tpu.memory_space<vmem>>, %arg5: memref<1x128xf32, #tpu.memory_space<vmem>>, %arg6: memref<128x128xf32, #tpu.memory_space<vmem>>, %arg7: memref<1x128xf32, #tpu.memory_space<vmem>>, %arg8: memref<8x128xf32, #tpu.memory_space<vmem>>) attributes {dimension_semantics = [#tpu.dimension_semantics<parallel>], iteration_bounds = array<i64: 1>, scalar_prefetch = 0 : i64, scratch_operands = 0 : i64, tpu.core_type = #tpu.core_type<tc>, window_params = [{transform_indices = @transform_0, window_bounds = array<i64: 8, 128>}, {pipeline_mode = #tpu.pipeline_mode<synchronous>, transform_indices = @transform_1, window_bounds = array<i64: 128, 128>}, {pipeline_mode = #tpu.pipeline_mode<synchronous>, transform_indices = @transform_2, window_bounds = array<i64: 1, 128>}, {pipeline_mode = #tpu.pipeline_mode<synchronous>, transform_indices = @transform_3, window_bounds = array<i64: 128, 128>}, {pipeline_mode = #tpu.pipeline_mode<synchronous>, transform_indices = @transform_4, window_bounds = array<i64: 1, 128>}, {pipeline_mode = #tpu.pipeline_mode<synchronous>, transform_indices = @transform_5, window_bounds = array<i64: 128, 128>}, {pipeline_mode = #tpu.pipeline_mode<synchronous>, transform_indices = @transform_6, window_bounds = array<i64: 1, 128>}, {transform_indices = @transform_7, window_bounds = array<i64: 8, 128>}]} {
    %c0 = arith.constant 0 : index
    %c0_0 = arith.constant 0 : index
    %0 = vector.load %arg1[%c0, %c0_0] : memref<8x128xf32, #tpu.memory_space<vmem>>, vector<8x128xf32>
    %c0_1 = arith.constant 0 : index
    %c0_2 = arith.constant 0 : index
    %1 = vector.load %arg2[%c0_1, %c0_2] : memref<128x128xf32, #tpu.memory_space<vmem>>, vector<128x128xf32>
    %c0_3 = arith.constant 0 : index
    %c0_4 = arith.constant 0 : index
    %2 = vector.load %arg3[%c0_3, %c0_4] : memref<1x128xf32, #tpu.memory_space<vmem>>, vector<1x128xf32>
    %cst = arith.constant dense<0.000000e+00> : vector<8x128xf32>
    %3 = tpu.matmul %0, %1, %cst {dimension_numbers = #tpu.dot_dimension_numbers<[1], [0], [0], [1], [0, 0, 1, 1], [], []>} : vector<8x128xf32>, vector<128x128xf32>, vector<8x128xf32> -> vector<8x128xf32>
    %4 = vector.broadcast %2 : vector<1x128xf32> to vector<8x128xf32>
    %5 = arith.addf %3, %4 : vector<8x128xf32>
    %cst_5 = arith.constant 0.000000e+00 : f32
    %6 = vector.broadcast %cst_5 : f32 to vector<8x128xf32>
    %7 = arith.maximumf %5, %6 : vector<8x128xf32>
    %c0_6 = arith.constant 0 : index
    %c0_7 = arith.constant 0 : index
    %8 = vector.load %arg4[%c0_6, %c0_7] : memref<128x128xf32, #tpu.memory_space<vmem>>, vector<128x128xf32>
    %c0_8 = arith.constant 0 : index
    %c0_9 = arith.constant 0 : index
    %9 = vector.load %arg5[%c0_8, %c0_9] : memref<1x128xf32, #tpu.memory_space<vmem>>, vector<1x128xf32>
    %cst_10 = arith.constant dense<0.000000e+00> : vector<8x128xf32>
    %10 = tpu.matmul %7, %8, %cst_10 {dimension_numbers = #tpu.dot_dimension_numbers<[1], [0], [0], [1], [0, 0, 1, 1], [], []>} : vector<8x128xf32>, vector<128x128xf32>, vector<8x128xf32> -> vector<8x128xf32>
    %11 = vector.broadcast %9 : vector<1x128xf32> to vector<8x128xf32>
    %12 = arith.addf %10, %11 : vector<8x128xf32>
    %cst_11 = arith.constant 0.000000e+00 : f32
    %13 = vector.broadcast %cst_11 : f32 to vector<8x128xf32>
    %14 = arith.maximumf %12, %13 : vector<8x128xf32>
    %c0_12 = arith.constant 0 : index
    %c0_13 = arith.constant 0 : index
    %15 = vector.load %arg6[%c0_12, %c0_13] : memref<128x128xf32, #tpu.memory_space<vmem>>, vector<128x128xf32>
    %c0_14 = arith.constant 0 : index
    %c0_15 = arith.constant 0 : index
    %16 = vector.load %arg7[%c0_14, %c0_15] : memref<1x128xf32, #tpu.memory_space<vmem>>, vector<1x128xf32>
    %cst_16 = arith.constant dense<0.000000e+00> : vector<8x128xf32>
    %17 = tpu.matmul %14, %15, %cst_16 {dimension_numbers = #tpu.dot_dimension_numbers<[1], [0], [0], [1], [0, 0, 1, 1], [], []>} : vector<8x128xf32>, vector<128x128xf32>, vector<8x128xf32> -> vector<8x128xf32>
    %18 = vector.broadcast %16 : vector<1x128xf32> to vector<8x128xf32>
    %19 = arith.addf %17, %18 : vector<8x128xf32>
    %c0_17 = arith.constant 0 : index
    %c0_18 = arith.constant 0 : index
    %20 = vector.load %arg8[%c0_17, %c0_18] : memref<8x128xf32, #tpu.memory_space<vmem>>, vector<8x128xf32>
    tpu.vector_store %arg8[%c0_17, %c0_18], %19 {strides = array<i32>} : memref<8x128xf32, #tpu.memory_space<vmem>>, vector<8x128xf32>,
    return
  }
  func.func @transform_0(%arg0: i32) -> (i32, i32) {
    %c0_i32 = arith.constant 0 : i32
    %c0_i32_0 = arith.constant 0 : i32
    return %arg0, %c0_i32 : i32, i32
  }
  func.func @transform_1(%arg0: i32) -> (i32, i32) {
    %c0_i32 = arith.constant 0 : i32
    %c0_i32_0 = arith.constant 0 : i32
    %c0_i32_1 = arith.constant 0 : i32
    return %c0_i32, %c0_i32_0 : i32, i32
  }
  func.func @transform_2(%arg0: i32) -> (i32, i32) {
    %c0_i32 = arith.constant 0 : i32
    %c0_i32_0 = arith.constant 0 : i32
    %c0_i32_1 = arith.constant 0 : i32
    return %c0_i32, %c0_i32_0 : i32, i32
  }
  func.func @transform_3(%arg0: i32) -> (i32, i32) {
    %c0_i32 = arith.constant 0 : i32
    %c0_i32_0 = arith.constant 0 : i32
    %c0_i32_1 = arith.constant 0 : i32
    return %c0_i32, %c0_i32_0 : i32, i32
  }
  func.func @transform_4(%arg0: i32) -> (i32, i32) {
    %c0_i32 = arith.constant 0 : i32
    %c0_i32_0 = arith.constant 0 : i32
    %c0_i32_1 = arith.constant 0 : i32
    return %c0_i32, %c0_i32_0 : i32, i32
  }
  func.func @transform_5(%arg0: i32) -> (i32, i32) {
    %c0_i32 = arith.constant 0 : i32
    %c0_i32_0 = arith.constant 0 : i32
    %c0_i32_1 = arith.constant 0 : i32
    return %c0_i32, %c0_i32_0 : i32, i32
  }
  func.func @transform_6(%arg0: i32) -> (i32, i32) {
    %c0_i32 = arith.constant 0 : i32
    %c0_i32_0 = arith.constant 0 : i32
    %c0_i32_1 = arith.constant 0 : i32
    return %c0_i32, %c0_i32_0 : i32, i32
  }
  func.func @transform_7(%arg0: i32) -> (i32, i32) {
    %c0_i32 = arith.constant 0 : i32
    %c0_i32_0 = arith.constant 0 : i32
    return %arg0, %c0_i32 : i32, i32
  }
}

</mosaic_0001>

<bundles_post_ra>
// kernel: mouse_mlp_forward.1
= control target key start
LH: loop header
LB: loop body
LE: loop exit
PB: predicated region body
PF: predicated region fallthrough
CT: control target
= control target key end

     0   :  { %s356_s1 = inlined_call_operand.vmem [shape: f32[128,128], index: 1, kind: input, shape index: {}]   ;;  %s357_s3 = inlined_call_operand.vmem [shape: f32[128,128], index: 3, kind: input, shape index: {}]   ;;  %s358_s2 = inlined_call_operand.vmem [shape: f32[1,128], index: 2, kind: input, shape index: {}]   ;;  %s359_s0 = inlined_call_operand.vmem [shape: f32[8,128], index: 0, kind: input, shape index: {}]   ;;  %s360_s4 = inlined_call_operand.vmem [shape: f32[1,128], index: 4, kind: input, shape index: {}]   ;;  %s361_s5 = inlined_call_operand.vmem [shape: f32[128,128], index: 5, kind: input, shape index: {}]   ;;  %s362_s6 = inlined_call_operand.vmem [shape: f32[1,128], index: 6, kind: input, shape index: {}]   ;;  %s363_s7 = inlined_call_operand.vmem [shape: f32[8,128], index: 7, kind: output, shape index: {}]  }
   0x1   :  { %v42_v0 = vld [vmem:[%s356_s1 + $0x78] sm:$0xff]  ;;  %v41_v1 = vld [vmem:[%s356_s1 + $0x70] sm:$0xff]  ;;  %v40_v2 = vld [vmem:[%s356_s1 + $0x68] sm:$0xff] }
   0x2   :  { %47 = vmatpush.msra.mxu0 %v42_v0  ;;  %v39_v3 = vld [vmem:[%s356_s1 + $0x60] sm:$0xff]  ;;  %v83_v4 = vld [vmem:[%s357_s3 + $0x78] sm:$0xff]  ;;  %v82_v6 = vld [vmem:[%s357_s3 + $0x70] sm:$0xff] }
   0x3   :  { %v38_v5 = vld [vmem:[%s356_s1 + $0x58] sm:$0xff]  ;;  %88 = vmatpush.msra.mxu1 %v83_v4  ;;  %v81_v7 = vld [vmem:[%s357_s3 + $0x68] sm:$0xff]  ;;  %v37_v8 = vld [vmem:[%s356_s1 + $0x50] sm:$0xff] }
   0x4   :  { %48 = vmatpush.msra.mxu0 %v41_v1  ;;  %v80_v9 = vld [vmem:[%s357_s3 + $0x60] sm:$0xff]  ;;  %v36_v10 = vld [vmem:[%s356_s1 + $0x48] sm:$0xff]  ;;  %v79_v11 = vld [vmem:[%s357_s3 + $0x58] sm:$0xff] }
   0x5   :  { %89 = vmatpush.msra.mxu1 %v82_v6  ;;  %v35_v12 = vld [vmem:[%s356_s1 + $0x40] sm:$0xff]  ;;  %v78_v13 = vld [vmem:[%s357_s3 + $0x50] sm:$0xff]  ;;  %v34_v14 = vld [vmem:[%s356_s1 + $0x38] sm:$0xff] }
   0x6   :  { %49 = vmatpush.msra.mxu0 %v40_v2  ;;  %v77_v15 = vld [vmem:[%s357_s3 + $0x48] sm:$0xff]  ;;  %v33_v16 = vld [vmem:[%s356_s1 + $0x30] sm:$0xff]  ;;  %v76_v17 = vld [vmem:[%s357_s3 + $0x40] sm:$0xff] }
   0x7   :  { %90 = vmatpush.msra.mxu1 %v81_v7  ;;  %v32_v18 = vld [vmem:[%s356_s1 + $0x28] sm:$0xff]  ;;  %v75_v19 = vld [vmem:[%s357_s3 + $0x38] sm:$0xff]  ;;  %v31_v20 = vld [vmem:[%s356_s1 + $0x20] sm:$0xff] }
   0x8   :  { %50 = vmatpush.msra.mxu0 %v39_v3  ;;  %v74_v21 = vld [vmem:[%s357_s3 + $0x30] sm:$0xff]  ;;  %v30_v22 = vld [vmem:[%s356_s1 + $0x18] sm:$0xff]  ;;  %v73_v23 = vld [vmem:[%s357_s3 + $0x28] sm:$0xff] }
   0x9   :  { %91 = vmatpush.msra.mxu1 %v80_v9  ;;  %v29_v24 = vld [vmem:[%s356_s1 + $0x10] sm:$0xff]  ;;  %v72_v25 = vld [vmem:[%s357_s3 + $0x20] sm:$0xff]  ;;  %v28_v26 = vld [vmem:[%s356_s1 + $0x8] sm:$0xff] }
   0xa   :  { %51 = vmatpush.msra.mxu0 %v38_v5  ;;  %v71_v27 = vld [vmem:[%s357_s3 + $0x18] sm:$0xff]  ;;  %v27_v28 = vld [vmem:[%s356_s1] sm:$0xff]  ;;  %v70_v30 = vld [vmem:[%s357_s3 + $0x10] sm:$0xff] }
   0xb   :  { %92 = vmatpush.msra.mxu1 %v79_v11  ;;  %v26_v29 = vld [vmem:[%s359_s0] sm:$0xff]  ;;  %v69_v31 = vld [vmem:[%s357_s3 + $0x8] sm:$0xff]  ;;  %v124_v33 = vld [vmem:[%s361_s5 + $0x78] sm:$0xff] }
   0xc   :  { %52 = vmatpush.msra.mxu0 %v37_v8  ;;  %v68_v32 = vld [vmem:[%s357_s3] sm:$0xff]  ;;  %v123_v34 = vld [vmem:[%s361_s5 + $0x70] sm:$0xff]  ;;  %129 = vmatpush.msra.mxu2 %v124_v33  ;;  %v122_v35 = vld [vmem:[%s361_s5 + $0x68] sm:$0xff] }
   0xd   :  { %93 = vmatpush.msra.mxu1 %v78_v13  ;;  %v121_v36 = vld [vmem:[%s361_s5 + $0x60] sm:$0xff]  ;;  %v120_v37 = vld [vmem:[%s361_s5 + $0x58] sm:$0xff]  ;;  %v119_v38 = vld [vmem:[%s361_s5 + $0x50] sm:$0xff] }
   0xe   :  { %53 = vmatpush.msra.mxu0 %v36_v10  ;;  %130 = vmatpush.msra.mxu2 %v123_v34  ;;  %v118_v39 = vld [vmem:[%s361_s5 + $0x48] sm:$0xff]  ;;  %v117_v40 = vld [vmem:[%s361_s5 + $0x40] sm:$0xff]  ;;  %v116_v41 = vld [vmem:[%s361_s5 + $0x38] sm:$0xff] }
   0xf   :  { %94 = vmatpush.msra.mxu1 %v77_v15  ;;  %v115_v42 = vld [vmem:[%s361_s5 + $0x30] sm:$0xff]  ;;  %v114_v43 = vld [vmem:[%s361_s5 + $0x28] sm:$0xff]  ;;  %v113_v44 = vld [vmem:[%s361_s5 + $0x20] sm:$0xff] }
  0x10   :  { %54 = vmatpush.msra.mxu0 %v35_v12  ;;  %131 = vmatpush.msra.mxu2 %v122_v35  ;;  %v112_v45 = vld [vmem:[%s361_s5 + $0x18] sm:$0xff]  ;;  %v154_v46 = vld [vmem:[%s358_s2] ss:$0 sm:$0xff]  ;;  %v111_v50 = vld [vmem:[%s361_s5 + $0x10] sm:$0xff] }
  0x11   :  { %95 = vmatpush.msra.mxu1 %v76_v17  ;;  %v110_v51 = vld [vmem:[%s361_s5 + $0x8] sm:$0xff]  ;;  %v109_v52 = vld [vmem:[%s361_s5] sm:$0xff] }
  0x12   :  { %55 = vmatpush.msra.mxu0 %v34_v14  ;;  %132 = vmatpush.msra.mxu2 %v121_v36  ;;  %v155_v53 = vld [vmem:[%s360_s4] ss:$0 sm:$0xff] }
  0x13   :  { %96 = vmatpush.msra.mxu1 %v75_v19  ;;  %v156_v57 = vld [vmem:[%s362_s6] ss:$0 sm:$0xff] }
  0x14   :  { %56 = vmatpush.msra.mxu0 %v33_v16  ;;  %133 = vmatpush.msra.mxu2 %v120_v37 }
  0x15   :  { %97 = vmatpush.msra.mxu1 %v74_v21 }
  0x16   :  { %57 = vmatpush.msra.mxu0 %v32_v18  ;;  %134 = vmatpush.msra.mxu2 %v119_v38 }
  0x17   :  { %98 = vmatpush.msra.mxu1 %v73_v23 }
  0x18   :  { %58 = vmatpush.msra.mxu0 %v31_v20  ;;  %135 = vmatpush.msra.mxu2 %v118_v39 }
  0x19   :  { %99 = vmatpush.msra.mxu1 %v72_v25 }
  0x1a   :  { %59 = vmatpush.msra.mxu0 %v30_v22  ;;  %136 = vmatpush.msra.mxu2 %v117_v40 }
  0x1b   :  { %100 = vmatpush.msra.mxu1 %v71_v27 }
  0x1c   :  { %60 = vmatpush.msra.mxu0 %v29_v24  ;;  %137 = vmatpush.msra.mxu2 %v116_v41 }
  0x1d   :  { %101 = vmatpush.msra.mxu1 %v70_v30 }
  0x1e   :  { %61 = vmatpush.msra.mxu0 %v28_v26  ;;  %138 = vmatpush.msra.mxu2 %v115_v42 }
  0x1f   :  { %102 = vmatpush.msra.mxu1 %v69_v31 }
  0x20   :  { %62 = vmatpush.msra.mxu0 %v27_v28  ;;  %139 = vmatpush.msra.mxu2 %v114_v43 }
  0x21   :  { %63 = vmatmul.f32.vlgmr.msra.gmra.mxu0 %v26_v29  ;;  %103 = vmatpush.msra.mxu1 %v68_v32 }
  0x22   :  { %140 = vmatpush.msra.mxu2 %v113_v44 }
  0x24   :  { %141 = vmatpush.msra.mxu2 %v112_v45 }
  0x26   :  { %142 = vmatpush.msra.mxu2 %v111_v50 }
  0x28   :  { %143 = vmatpush.msra.mxu2 %v110_v51 }
  0x2a   :  { %144 = vmatpush.msra.mxu2 %v109_v52 }
  0x9e   :  { %v64_v47 = vpop.f32.mrf.mxu0 }
  0x9f   :  { %v65_v48 = vadd.f32 %v154_v46, %v64_v47 }
  0xa1   :  { %v67_v49 = vmax.f32 %v65_v48, 0.0 }
  0xa3   :  { %104 = vmatmul.f32.vlgmr.msra.gmra.mxu1 %v67_v49 }
 0x120   :  { %v105_v54 = vpop.f32.mrf.mxu1 }
 0x121   :  { %v106_v55 = vadd.f32 %v155_v53, %v105_v54 }
 0x123   :  { %v108_v56 = vmax.f32 %v106_v55, 0.0 }
 0x125   :  { %145 = vmatmul.f32.vlgmr.msra.gmra.mxu2 %v108_v56 }
 0x1a8   :  { %v146_v58 = vpop.f32.mrf.mxu2 }
 0x1a9   :  { %v147_v59 = vadd.f32 %v156_v57, %v146_v58 }
 0x1ab   :  { %149 = vst [vmem:[%s363_s7] sm:$0xff] %v147_v59 }

</bundles_post_ra>
